<compile_context>
chip_gen: v5e
topology: v5e:2x2
jax: 0.10.0
libtpu: 0.0.40
codegen_flags: <defaults>
</compile_context>

<pallas_src>
import math

import jax
import jax.numpy as jnp
from jax import lax
from jax.experimental import pallas as pl
from jax.experimental.pallas import tpu as pltpu

# ----------------------------- config (small, synthetic) -----------------------------
BATCH = 2
SEQ_LEN = 8      # L
DIM = 32         # d_in == d_out
NUM_EIGH = 16    # K
R = 8            # r (tensordot rank)


# ----------------------------- helpers ported from the module ------------------------
def nearest_power_of_two(x: int, round_up: bool = False) -> int:
    return 1 << (math.ceil(math.log2(x)) if round_up else math.floor(math.log2(x)))


def get_opt_degree(seq_len: int) -> int:
    return int(math.ceil(7 / 6 * math.log2(seq_len)))


def poly_mul_x(poly):
    return [0] + poly


def poly_scale(poly, factor):
    return [c * factor for c in poly]


def poly_sub(p1, p2):
    n = max(len(p1), len(p2))
    return [(p1[i] if i < len(p1) else 0) - (p2[i] if i < len(p2) else 0) for i in range(n)]


def chebyshev_coeff(n):
    if n == 0:
        return [1]
    if n == 1:
        return [0, 1]
    T_nm2, T_nm1 = [1], [0, 1]
    for _ in range(2, n + 1):
        T_n = poly_sub(poly_scale(poly_mul_x(T_nm1), 2), T_nm2)
        T_nm2, T_nm1 = T_nm1, T_n
    return T_n


def monic_chebyshev_coeff(n):
    c = chebyshev_coeff(n)
    lead = c[-1]
    return [x / lead for x in c]


# ----------------------------- Pallas kernel -----------------------------------------
def stu_kernel(u_ref, tn_ref, phi2_ref, mi_ref, w_ref, b_ref, o_ref):
    # u_ref:    (B*L, D)     batch-folded input
    # tn_ref:   (B*L, B*L)   block-diagonal negative Toeplitz (Chebyshev causal conv)
    # phi2_ref: (L, r)       2 * (stu_filters @ M_filters)   (only even rows are used)
    # mi_ref:   (D, r)       M_inputs
    # w_ref:    (r, Dp)      out_proj weight^T, zero-padded to 128 lanes
    # b_ref:    (1, Dp)      out_proj bias, zero-padded to 128 lanes
    # o_ref:    (B*L, Dp)    lane-dense output
    BL = u_ref.shape[0]
    L, r = phi2_ref.shape

    u = u_ref[...]                                                         # (BL, D)

    # Single input projection; p_proj is the same projection pushed through the
    # (channel-independent) Chebyshev conv, i.e. one more small MXU matmul.
    u_proj = jnp.dot(u, mi_ref[...], preferred_element_type=jnp.float32)   # (BL, r)
    acc = jnp.dot(tn_ref[...], u_proj, preferred_element_type=jnp.float32)  # p_proj

    phi2 = phi2_ref[...]                                                   # (L, r)

    # f = 0 tap (no shift, no mask needed).
    acc = acc + phi2[0:1, :] * u_proj

    # Even taps only: odd taps cancel exactly in S+ + S-.
    # Shift on the XLU (pltpu.roll) and mask rows whose local time t < f
    # (this also blocks leakage across the folded batch boundary).
    t_loc = lax.broadcasted_iota(jnp.int32, (BL, r), 0) % L
    for f in range(2, L, 2):   # statically unrolled: fine at L=8
        shifted = pltpu.roll(u_proj, shift=f, axis=0)                      # shifted[i] = u_proj[i-f]
        tap = jnp.where(t_loc >= f, shifted, 0.0) * phi2[f:f + 1, :]
        acc = acc + tap

    out = jnp.dot(acc, w_ref[...], preferred_element_type=jnp.float32) + b_ref[...]
    o_ref[...] = out.astype(o_ref.dtype)


def stu_forward(u, p_coeffs_kernel, stu_filters, M_inputs, M_filters, W_out, b_out):
    B, L, D = u.shape
    Fp = p_coeffs_kernel.shape[0]
    r = M_inputs.shape[1]

    # ---- batch-invariant precompute (host/XLA, tiny) ---------------------------------
    # phi_proj hoisted out of the kernel; factor 2 folds the S+/S- even-tap sum.
    phi_proj = stu_filters.astype(jnp.float32) @ M_filters.astype(jnp.float32)   # (L, r)
    phi2 = 2.0 * phi_proj

    # Negative Toeplitz for  -fft_conv(u, pk, mode='same', causal=True):
    #   result[t] = sum_j u[t+j] * pk[Fp-1-j]   (t+j < L)
    # pk columns are identical by construction, so the conv commutes with @M_inputs.
    pk = p_coeffs_kernel[:, 0].astype(jnp.float32)                               # (Fp,)
    t_idx = jnp.arange(L)[:, None]
    s_idx = jnp.arange(L)[None, :]
    d = s_idx - t_idx
    T = jnp.where((d >= 0) & (d < Fp), pk[jnp.clip(Fp - 1 - d, 0, Fp - 1)], 0.0)  # (L, L)
    Tn_bd = jnp.kron(jnp.eye(B, dtype=jnp.float32), -T)                           # (B*L, B*L)

    # Lane-dense output: pad out-proj weight/bias to a multiple of 128 lanes so the
    # kernel stores full-width vregs; slice back to D in the wrapper.
    Dp = ((D + 127) // 128) * 128
    W_pad = jnp.zeros((r, Dp), jnp.float32).at[:, :D].set(W_out.astype(jnp.float32))
    b_pad = jnp.zeros((1, Dp), jnp.float32).at[:, :D].set(
        b_out.astype(jnp.float32).reshape(1, D))

    u_flat = u.reshape(B * L, D).astype(jnp.float32)

    out_flat = pl.pallas_call(
        stu_kernel,
        out_shape=jax.ShapeDtypeStruct((B * L, Dp), jnp.float32),
        # grid=(): single kernel step; every operand is a whole-array VMEM block
        # (per-grid-step overhead dominated the previous 2-step version).
        in_specs=[pl.BlockSpec(memory_space=pltpu.MemorySpace.VMEM)] * 6,
        out_specs=pl.BlockSpec(memory_space=pltpu.MemorySpace.VMEM),
    )(u_flat, Tn_bd, phi2, M_inputs.astype(jnp.float32), W_pad, b_pad)

    return out_flat[:, :D].reshape(B, L, D)


# ----------------------------- pure-JAX FFT reference (mirrors the torch code) --------
def ref_forward(u, pk, filters, M_inputs, M_filters, W_out, b_out, n_fft):
    B, L, D = u.shape
    Fp = pk.shape[0]
    # fft_conv(u, pk, mode='same', causal=True)
    conv_len = L + Fp - 1
    flen = nearest_power_of_two(conv_len, round_up=True)
    u_p = jnp.pad(u, ((0, 0), (0, flen - L), (0, 0)))
    v_p = jnp.pad(pk[:, :, None], ((0, flen - Fp), (0, 0), (0, 0)))
    Uf = jnp.fft.rfft(u_p, n=flen, axis=1)[..., None]
    Vf = jnp.fft.rfft(v_p, n=flen, axis=0)[None]
    conv = jnp.fft.irfft(Uf * Vf, n=flen, axis=1)
    p_conv = -conv[:, Fp - 1:Fp - 1 + L, :, 0]

    u_proj = u @ M_inputs
    p_proj = p_conv @ M_inputs
    phi_proj = filters @ M_filters

    sgn = jnp.where(jnp.arange(L) % 2 == 0, 1.0, -1.0)[None, :, None]
    v = phi_proj[None, :, :, None].astype(jnp.float32)
    Vf2 = jnp.fft.rfft(v, n=n_fft, axis=1)
    U = jnp.stack([u_proj, u_proj * sgn], axis=-1).astype(jnp.float32)
    Uf2 = jnp.fft.rfft(U, n=n_fft, axis=1)
    Uc = jnp.fft.irfft(Vf2 * Uf2, n=n_fft, axis=1)[:, :L]
    U_plus = Uc[..., 0]
    U_minus = Uc[..., 1] * sgn

    out = U_plus + U_minus + p_proj
    return out @ W_out + b_out[None, :, :]


# ----------------------------- main ----------------------------------------------------
if __name__ == "__main__":
    key = jax.random.PRNGKey(0)
    k_u, k_f, k_mi, k_mf, k_w, k_b = jax.random.split(key, 6)

    # input
    u = jax.random.normal(k_u, (BATCH, SEQ_LEN, DIM), dtype=jnp.float32)

    # p_coeffs_kernel: monic Chebyshev coeffs, (deg+1, 1) repeated over d_in
    coeffs = monic_chebyshev_coeff(get_opt_degree(SEQ_LEN))
    p_coeffs_kernel = jnp.tile(
        jnp.asarray(coeffs, dtype=jnp.float32)[:, None], (1, DIM)
    )  # (Fp, D)

    # synthetic spectral filters and parameters (deterministic)
    stu_filters = jax.random.normal(k_f, (SEQ_LEN, NUM_EIGH), dtype=jnp.float32) * 0.5
    M_inputs = jax.random.normal(k_mi, (DIM, R), dtype=jnp.float32) * 0.05
    M_filters = jax.random.normal(k_mf, (NUM_EIGH, R), dtype=jnp.float32) * 0.05
    W_out = jax.random.normal(k_w, (R, DIM), dtype=jnp.float32) * 0.05   # out_proj weight^T
    b_out = jax.random.normal(k_b, (1, DIM), dtype=jnp.float32) * 0.01   # out_proj bias

    n_fft = nearest_power_of_two(SEQ_LEN * 2 - 1, round_up=True)

    out = jax.jit(stu_forward)(u, p_coeffs_kernel, stu_filters, M_inputs, M_filters,
                               W_out, b_out)
    out = jax.block_until_ready(out)

    ref = ref_forward(u, p_coeffs_kernel, stu_filters, M_inputs, M_filters, W_out, b_out, n_fft)
    ref = jax.block_until_ready(ref)

    assert out.shape == (BATCH, SEQ_LEN, DIM)
    assert jnp.allclose(out, ref, atol=1e-3, rtol=1e-3), float(jnp.max(jnp.abs(out - ref)))

    # TODO(synk): FlashFFTConv path (config.use_flash_fft=True) not implemented; this
    # kernel covers the stu_conv/fft_conv fallback used when flash_fft is None.
    print("KERNEL_OK")
</pallas_src>

<mosaic_0001>
module attributes {stable_mosaic.version = 11 : i64} {
  func.func @stu_kernel(%arg0: memref<16x32xf32, #tpu.memory_space<vmem>>, %arg1: memref<16x16xf32, #tpu.memory_space<vmem>>, %arg2: memref<8x8xf32, #tpu.memory_space<vmem>>, %arg3: memref<32x8xf32, #tpu.memory_space<vmem>>, %arg4: memref<8x128xf32, #tpu.memory_space<vmem>>, %arg5: memref<1x128xf32, #tpu.memory_space<vmem>>, %arg6: memref<16x128xf32, #tpu.memory_space<vmem>>) attributes {dimension_semantics = [], scalar_prefetch = 0 : i64, scratch_operands = 0 : i64, tpu.core_type = #tpu.core_type<tc>} {
    %c0 = arith.constant 0 : index
    %c0_0 = arith.constant 0 : index
    %0 = vector.load %arg0[%c0, %c0_0] : memref<16x32xf32, #tpu.memory_space<vmem>>, vector<16x32xf32>
    %c0_1 = arith.constant 0 : index
    %c0_2 = arith.constant 0 : index
    %1 = vector.load %arg3[%c0_1, %c0_2] : memref<32x8xf32, #tpu.memory_space<vmem>>, vector<32x8xf32>
    %cst = arith.constant dense<0.000000e+00> : vector<16x8xf32>
    %2 = tpu.matmul %0, %1, %cst {dimension_numbers = #tpu.dot_dimension_numbers<[1], [0], [0], [1], [0, 0, 1, 1], [], []>} : vector<16x32xf32>, vector<32x8xf32>, vector<16x8xf32> -> vector<16x8xf32>
    %c0_3 = arith.constant 0 : index
    %c0_4 = arith.constant 0 : index
    %3 = vector.load %arg1[%c0_3, %c0_4] : memref<16x16xf32, #tpu.memory_space<vmem>>, vector<16x16xf32>
    %cst_5 = arith.constant dense<0.000000e+00> : vector<16x8xf32>
    %4 = tpu.matmul %3, %2, %cst_5 {dimension_numbers = #tpu.dot_dimension_numbers<[1], [0], [0], [1], [0, 0, 1, 1], [], []>} : vector<16x16xf32>, vector<16x8xf32>, vector<16x8xf32> -> vector<16x8xf32>
    %c0_6 = arith.constant 0 : index
    %c0_7 = arith.constant 0 : index
    %5 = vector.load %arg2[%c0_6, %c0_7] : memref<8x8xf32, #tpu.memory_space<vmem>>, vector<8x8xf32>
    %6 = vector.extract_strided_slice %5 {offsets = [0, 0], sizes = [1, 8], strides = [1, 1]} : vector<8x8xf32> to vector<1x8xf32>
    %7 = vector.broadcast %6 : vector<1x8xf32> to vector<16x8xf32>
    %8 = arith.mulf %7, %2 : vector<16x8xf32>
    %9 = arith.addf %4, %8 : vector<16x8xf32>
    %10 = tpu.iota {dimensions = array<i32: 0>} : vector<16x8xi32>
    %c8_i32 = arith.constant 8 : i32
    %c0_i32 = arith.constant 0 : i32
    %11 = arith.cmpi eq, %c8_i32, %c0_i32 : i32
    %c1_i32 = arith.constant 1 : i32
    %12 = arith.select %11, %c1_i32, %c8_i32 : i32
    %13 = vector.broadcast %12 : i32 to vector<16x8xi32>
    %14 = arith.remsi %10, %13 : vector<16x8xi32>
    %c0_i32_8 = arith.constant 0 : i32
    %15 = vector.broadcast %c0_i32_8 : i32 to vector<16x8xi32>
    %16 = arith.cmpi ne, %14, %15 : vector<16x8xi32>
    %c0_i32_9 = arith.constant 0 : i32
    %17 = vector.broadcast %c0_i32_9 : i32 to vector<16x8xi32>
    %18 = arith.cmpi slt, %14, %17 : vector<16x8xi32>
    %c0_i32_10 = arith.constant 0 : i32
    %19 = arith.cmpi slt, %12, %c0_i32_10 : i32
    %20 = vector.broadcast %19 : i1 to vector<16x8xi1>
    %21 = vector.broadcast %20 : vector<16x8xi1> to vector<16x8xi1>
    %22 = arith.xori %18, %21 : vector<16x8xi1>
    %23 = arith.andi %22, %16 : vector<16x8xi1>
    %24 = vector.broadcast %12 : i32 to vector<16x8xi32>
    %25 = arith.addi %14, %24 : vector<16x8xi32>
    %26 = arith.select %23, %25, %14 : vector<16x8xi1>, vector<16x8xi32>
    %c2_i32 = arith.constant 2 : i32
    %27 = tpu.dynamic_rotate %2 by %c2_i32 dim 0 : vector<16x8xf32>, i32 -> vector<16x8xf32>
    %c2_i32_11 = arith.constant 2 : i32
    %28 = vector.broadcast %c2_i32_11 : i32 to vector<16x8xi32>
    %29 = arith.cmpi sge, %26, %28 : vector<16x8xi32>
    %cst_12 = arith.constant 0.000000e+00 : f32
    %30 = vector.broadcast %cst_12 : f32 to vector<16x8xf32>
    %31 = arith.select %29, %27, %30 : vector<16x8xi1>, vector<16x8xf32>
    %32 = vector.extract_strided_slice %5 {offsets = [2, 0], sizes = [1, 8], strides = [1, 1]} : vector<8x8xf32> to vector<1x8xf32>
    %33 = vector.broadcast %32 : vector<1x8xf32> to vector<16x8xf32>
    %34 = arith.mulf %31, %33 : vector<16x8xf32>
    %35 = arith.addf %9, %34 : vector<16x8xf32>
    %c4_i32 = arith.constant 4 : i32
    %36 = tpu.dynamic_rotate %2 by %c4_i32 dim 0 : vector<16x8xf32>, i32 -> vector<16x8xf32>
    %c4_i32_13 = arith.constant 4 : i32
    %37 = vector.broadcast %c4_i32_13 : i32 to vector<16x8xi32>
    %38 = arith.cmpi sge, %26, %37 : vector<16x8xi32>
    %cst_14 = arith.constant 0.000000e+00 : f32
    %39 = vector.broadcast %cst_14 : f32 to vector<16x8xf32>
    %40 = arith.select %38, %36, %39 : vector<16x8xi1>, vector<16x8xf32>
    %41 = vector.extract_strided_slice %5 {offsets = [4, 0], sizes = [1, 8], strides = [1, 1]} : vector<8x8xf32> to vector<1x8xf32>
    %42 = vector.broadcast %41 : vector<1x8xf32> to vector<16x8xf32>
    %43 = arith.mulf %40, %42 : vector<16x8xf32>
    %44 = arith.addf %35, %43 : vector<16x8xf32>
    %c6_i32 = arith.constant 6 : i32
    %45 = tpu.dynamic_rotate %2 by %c6_i32 dim 0 : vector<16x8xf32>, i32 -> vector<16x8xf32>
    %c6_i32_15 = arith.constant 6 : i32
    %46 = vector.broadcast %c6_i32_15 : i32 to vector<16x8xi32>
    %47 = arith.cmpi sge, %26, %46 : vector<16x8xi32>
    %cst_16 = arith.constant 0.000000e+00 : f32
    %48 = vector.broadcast %cst_16 : f32 to vector<16x8xf32>
    %49 = arith.select %47, %45, %48 : vector<16x8xi1>, vector<16x8xf32>
    %50 = vector.extract_strided_slice %5 {offsets = [6, 0], sizes = [1, 8], strides = [1, 1]} : vector<8x8xf32> to vector<1x8xf32>
    %51 = vector.broadcast %50 : vector<1x8xf32> to vector<16x8xf32>
    %52 = arith.mulf %49, %51 : vector<16x8xf32>
    %53 = arith.addf %44, %52 : vector<16x8xf32>
    %c0_17 = arith.constant 0 : index
    %c0_18 = arith.constant 0 : index
    %54 = vector.load %arg4[%c0_17, %c0_18] : memref<8x128xf32, #tpu.memory_space<vmem>>, vector<8x128xf32>
    %cst_19 = arith.constant dense<0.000000e+00> : vector<16x128xf32>
    %55 = tpu.matmul %53, %54, %cst_19 {dimension_numbers = #tpu.dot_dimension_numbers<[1], [0], [0], [1], [0, 0, 1, 1], [], []>} : vector<16x8xf32>, vector<8x128xf32>, vector<16x128xf32> -> vector<16x128xf32>
    %c0_20 = arith.constant 0 : index
    %c0_21 = arith.constant 0 : index
    %56 = vector.load %arg5[%c0_20, %c0_21] : memref<1x128xf32, #tpu.memory_space<vmem>>, vector<1x128xf32>
    %57 = vector.broadcast %56 : vector<1x128xf32> to vector<16x128xf32>
    %58 = arith.addf %55, %57 : vector<16x128xf32>
    %c0_22 = arith.constant 0 : index
    %c0_23 = arith.constant 0 : index
    %59 = vector.load %arg6[%c0_22, %c0_23] : memref<16x128xf32, #tpu.memory_space<vmem>>, vector<16x128xf32>
    tpu.vector_store %arg6[%c0_22, %c0_23], %58 {strides = array<i32>} : memref<16x128xf32, #tpu.memory_space<vmem>>, vector<16x128xf32>,
    return
  }
}

</mosaic_0001>

<bundles_post_ra>
// kernel: stu_forward.1
= control target key start
LH: loop header
LB: loop body
LE: loop exit
PB: predicated region body
PF: predicated region fallthrough
CT: control target
= control target key end

     0   :  { %vm29_vm0 = vcmask 261120   ;;  %v95_v6 = vlaneseq  ;;  %vm65_vm3 = vcmask 130048   ;;  %vm169_vm10 = vcmask 64512   ;;  %s290_s3 = inlined_call_operand.vmem [shape: f32[32,8], index: 3, kind: input, shape index: {}]   ;;  %s291_s0 = inlined_call_operand.vmem [shape: f32[16,32], index: 0, kind: input, shape index: {}]   ;;  %s292_s1 = inlined_call_operand.vmem [shape: f32[16,16], index: 1, kind: input, shape index: {}]   ;;  %s293_s5 = inlined_call_operand.vmem [shape: f32[1,128], index: 5, kind: input, shape index: {}]   ;;  %s294_s4 = inlined_call_operand.vmem [shape: f32[8,128], index: 4, kind: input, shape index: {}]   ;;  %s295_s2 = inlined_call_operand.vmem [shape: f32[8,8], index: 2, kind: input, shape index: {}]   ;;  %s296_s6 = inlined_call_operand.vmem [shape: f32[16,128], index: 6, kind: output, shape index: {}]  }
   0x1   :  { %v28_v0 = vld [vmem:[%s290_s3 + $0x18] sm:$0xff]  ;;  %v27_v1 = vld [vmem:[%s290_s3 + $0x10] sm:$0xff]  ;;  %v26_v2 = vld [vmem:[%s290_s3 + $0x8] sm:$0xff] }
   0x2   :  { %211 = vmatpush.msra.mxu3 %v28_v0  ;;  %48 = vmatpush.msra.mxu0 %v28_v0  ;;  %v25_v3 = vld [vmem:[%s290_s3] sm:$0xff]  ;;  %v24_v4 = vld [vmem:[%s291_s0 + $0x8] sm:$0xff]  ;;  %v96_v8 = vshrl.u32 %v95_v6, 7 }
   0x3   :  { %v23_v5 = vld [vmem:[%s291_s0] sm:$0xff]  ;;  %v60_v23 = vld [vmem:[%s292_s1 + $0x8] sm:$0xff] }
   0x4   :  { %212 = vmatpush.msra.mxu3 %v27_v1  ;;  %49 = vmatpush.msra.mxu0 %v27_v1  ;;  %vm124_vm1 = vcmp.lt.s32.totalorder %v96_v8, 2  ;;  %vm138_vm2 = vcmp.lt.s32.totalorder %v96_v8, 4  ;;  %v59_v14 = vld [vmem:[%s292_s1] sm:$0xff]  ;;  %vm152_vm4 = vcmp.lt.s32.totalorder %v96_v8, 6  ;;  %v102_v25 = vand.u32 7, %v96_v8 }
   0x5   :  { %v164_v24 = vld [vmem:[%s294_s4] sm:$0xff]  ;;  %v97_v27 = vadd.s32 8, %v96_v8 }
   0x6   :  { %213 = vmatpush.msra.mxu3 %v26_v2  ;;  %50 = vmatpush.msra.mxu0 %v26_v2  ;;  %v61_v26 = vld [vmem:[%s295_s2] sm:$0xff]  ;;  %vm127_vm5 = vcmp.ge.s32.totalorder %v102_v25, 2  ;;  %vm141_vm6 = vcmp.ge.s32.totalorder %v102_v25, 4  ;;  %vm155_vm7 = vcmp.ge.s32.totalorder %v102_v25, 6 }
   0x7   :  { %191 = vmatpush.msra.mxu2 %v164_v24  ;;  %v62_v28 = vperm.slane %v61_v26, 0  ;;  %v131_v29 = vperm.slane %v61_v26, 2  ;;  %v145_v32 = vperm.slane %v61_v26, 4  ;;  %v109_v33 = vand.u32 7, %v97_v27  ;;  %v215_v57 = vld [vmem:[%s293_s5] ss:$0 sm:$0xff] }
   0x8   :  { %214 = vmatpush.msra.mxu3 %v25_v3  ;;  %51 = vmatpush.msra.mxu0 %v25_v3  ;;  %v159_v38 = vperm.slane %v61_v26, 6 }
   0x9   :  { %206 = vmatmul.msk.f32.vlgmr.msra.gmra.mxu3 %vm29_vm0, %v24_v4  ;;  %205 = vmatmul.msk.f32.vlgmr.msra.gmra.mxu0 %vm29_vm0, %v23_v5  ;;  %vm128_vm8 = vcmp.ge.s32.totalorder %v109_v33, 2  ;;  %vm142_vm9 = vcmp.ge.s32.totalorder %v109_v33, 4  ;;  %vm156_vm11 = vcmp.ge.s32.totalorder %v109_v33, 6 }
  0x86   :  { %v53_v7 = vpop.f32.mrf.mxu0 }
  0x87   :  { %v122_v9 = vrot.slane %v53_v7, 6  ;;  %v136_v10 = vrot.slane %v53_v7, 4  ;;  %v150_v15 = vrot.slane %v53_v7, 2  ;;  %v63_v31 = vmul.f32 %v62_v28, %v53_v7 }
  0x8c   :  { %v56_v11 = vpop.f32.mrf.mxu3 }
  0x8d   :  { %v123_v12 = vrot.slane %v56_v11, 6  ;;  %v137_v13 = vrot.slane %v56_v11, 4  ;;  %86 = vmatpush.msra.mxu1 %v56_v11  ;;  %v151_v16 = vrot.slane %v56_v11, 2  ;;  %v64_v45 = vmul.f32 %v62_v28, %v56_v11 }
  0x8f   :  { %87 = vmatpush.msra.mxu1 %v53_v7  ;;  %v126_v17 = vsel %vm124_vm1, %v123_v12, %v122_v9  ;;  %v140_v18 = vsel %vm138_vm2, %v137_v13, %v136_v10  ;;  %v125_v19 = vsel %vm124_vm1, %v122_v9, %v123_v12  ;;  %v139_v20 = vsel %vm138_vm2, %v136_v10, %v137_v13 }
  0x90   :  { %207 = vmatmul.msk.f32.vlgmr.msra.gmra.mxu1 %vm65_vm3, %v59_v14  ;;  %v154_v21 = vsel %vm152_vm4, %v151_v16, %v150_v15  ;;  %v153_v22 = vsel %vm152_vm4, %v150_v15, %v151_v16  ;;  %v129_v30 = vsel %vm127_vm5, %v126_v17, 0.0  ;;  %v143_v35 = vsel %vm141_vm6, %v140_v18, 0.0 }
  0x91   :  { %v132_v37 = vmul.f32 %v131_v29, %v129_v30  ;;  %v157_v39 = vsel %vm155_vm7, %v154_v21, 0.0  ;;  %v146_v41 = vmul.f32 %v145_v32, %v143_v35  ;;  %v130_v44 = vsel %vm128_vm8, %v125_v19, 0.0 }
  0x92   :  { %v160_v43 = vmul.f32 %v159_v38, %v157_v39  ;;  %v144_v48 = vsel %vm142_vm9, %v139_v20, 0.0  ;;  %v133_v50 = vmul.f32 %v131_v29, %v130_v44  ;;  %v158_v51 = vsel %vm156_vm11, %v153_v22, 0.0 }
  0x93   :  { %v147_v53 = vmul.f32 %v145_v32, %v144_v48  ;;  %v161_v55 = vmul.f32 %v159_v38, %v158_v51 }
  0x98   :  { %208 = vmatmul.msk.f32.gmra.mxu1 %vm65_vm3, %v60_v23 }
 0x10d   :  { %v89_v34 = vpop.f32.mrf.mxu1 }
 0x10e   :  { %v90_v36 = vadd.f32 %v89_v34, %v63_v31 }
 0x110   :  { %v134_v40 = vadd.f32 %v132_v37, %v90_v36 }
 0x112   :  { %v148_v42 = vadd.f32 %v146_v41, %v134_v40 }
 0x114   :  { %v162_v46 = vadd.f32 %v160_v43, %v148_v42 }
 0x115   :  { %v92_v47 = vpop.f32.mrf.mxu1 }
 0x116   :  { %v93_v49 = vadd.f32 %v92_v47, %v64_v45  ;;  %209 = vmatmul.msk.f32.vlgmr.msra.gmra.mxu2 %vm169_vm10, %v162_v46 }
 0x118   :  { %v135_v52 = vadd.f32 %v133_v50, %v93_v49 }
 0x11a   :  { %v149_v54 = vadd.f32 %v147_v53, %v135_v52 }
 0x11c   :  { %v163_v56 = vadd.f32 %v161_v55, %v149_v54 }
 0x11e   :  { %210 = vmatmul.msk.f32.gmra.mxu2 %vm169_vm10, %v163_v56 }
 0x199   :  { %v193_v58 = vpop.f32.mrf.mxu2 }
 0x19a   :  { %v194_v59 = vadd.f32 %v215_v57, %v193_v58 }
 0x19c   :  { %199 = vst [vmem:[%s296_s6] sm:$0xff] %v194_v59 }
 0x1a1   :  { %v196_v60 = vpop.f32.mrf.mxu2 }
 0x1a2   :  { %v197_v61 = vadd.f32 %v215_v57, %v196_v60 }
 0x1a4   :  { %200 = vst [vmem:[%s296_s6 + $0x8] sm:$0xff] %v197_v61 }

</bundles_post_ra>
